<compile_context>
chip_gen: v7x
topology: tpu7x:2x2x1
jax: 0.10.0
libtpu: 0.0.40
codegen_flags: <defaults>
</compile_context>

<pallas_src>
import jax
import jax.numpy as jnp
from jax.experimental import pallas as pl
from jax.experimental.pallas import tpu as pltpu


# ----------------------------- config -----------------------------------
class Config:
    hiddenSize = 32
    numLayers = 2
    activation = "ELU"   # Dreamer default; implemented elementwise in-kernel


def _elu(h):
    # ELU(alpha=1): x if x > 0 else exp(x) - 1.
    # minimum() keeps the unselected exp branch finite for large h.
    return jnp.where(h > 0, h, jnp.exp(jnp.minimum(h, 0.0)) - 1.0)


def _round_up(n, m):
    return ((n + m - 1) // m) * m


def _mxu_target_lanes():
    """256 lanes on v6e/v7x (2x256 MXU), 128 on older generations."""
    try:
        kind = jax.devices()[0].device_kind.lower()
        for old in ("v2", "v3", "v4", "v5"):
            if old in kind:
                return 128
    except Exception:
        pass
    return 256


def _vmem_limit_bytes():
    """Generation-aware scoped-VMEM request (half of physical, <= 64 MiB)."""
    try:
        cap = int(pltpu.get_tpu_info().vmem_capacity_bytes)
    except Exception:
        cap = 64 * 2**20
    return int(min(cap // 2, 64 * 2**20))


# ----------------------------- kernel ------------------------------------
def _make_kernel(num_hidden_layers, compute_dtype):
    """MLP + exp(logStd) for one (folded) batch tile.

    Ref order: x, (W0, b0), ..., (W_out, b_out), out.
    Weights are block-diagonal (lane-folded); columns of `out` alternate
    mean / std for the `fold` rows packed into each folded row.
    """

    def kernel(*refs):
        x_ref = refs[0]
        out_ref = refs[-1]
        params = refs[1:-1]

        h = x_ref[...]
        # hidden layers: Linear + ELU (f32 accumulation, compute_dtype MXU in)
        for i in range(num_hidden_layers):
            w = params[2 * i][...]
            b = params[2 * i + 1][...]
            acc = jnp.dot(h, w, preferred_element_type=jnp.float32) + b
            h = _elu(acc).astype(compute_dtype)
        # output layer: Linear to fold*(mean, logStd) -- no activation
        o = (jnp.dot(h, params[-2][...], preferred_element_type=jnp.float32)
             + params[-1][...])

        # Single full-tile select: even columns -> mean (identity),
        # odd columns -> std = exp(logStd).  No slice+concat copies; exp
        # runs on the EUP slot.
        col = jax.lax.broadcasted_iota(jnp.int32, o.shape, dimension=1)
        out_ref[...] = jnp.where(col % 2 == 1, jnp.exp(o), o)

    return kernel


# ----------------------------- wrapper ------------------------------------
def reward_model_forward(x, params, *, fold=None, block_rows=None,
                         compute_dtype=None):
    """RewardModel forward as a batch-tiled, lane-folded Pallas kernel.

    Args:
      x: (batch, inputSize) array.
      params: flat list [W0, b0, ..., W_out, b_out]; W_i is (in, out),
        b_i is (1, out).
      fold: batch rows folded into the lane dim (default: auto -- targets
        the chip's MXU width: 8 for 32-wide features on v6e/v7x, 4 on <=v5).
      block_rows: optional override for batch rows per grid step (testing).
      compute_dtype: dtype fed to the MXU; default x.dtype so no extra
        wrapper-side cast pass is introduced.  Accumulation is always f32.
    Returns:
      (mean, std): each (batch,) float32 -- the parameters of the Normal.
    """
    batch, input_size = x.shape
    num_layers = len(params) // 2            # hidden layers + output layer
    num_hidden_layers = num_layers - 1
    out_features = params[-2].shape[1]       # == 2 (mean, logStd)

    if compute_dtype is None:
        compute_dtype = x.dtype
    cdt_size = jnp.dtype(compute_dtype).itemsize

    # ---- lane fold: pack `fold` batch rows into the lane dimension --------
    if fold is None:
        fold = max(1, _mxu_target_lanes() // input_size)
    in_w = fold * input_size
    out_w = fold * out_features
    if num_hidden_layers:
        hid_w = fold * max(w.shape[1] for w in params[0:-2:2])
    else:
        hid_w = in_w

    # Block-diagonal weights / tiled biases (tiny; built once at trace time).
    eye = jnp.eye(fold, dtype=jnp.float32)
    folded_params = []
    for i in range(num_layers):
        w = params[2 * i].astype(jnp.float32)
        b = params[2 * i + 1].astype(jnp.float32)
        folded_params.append(jnp.kron(eye, w).astype(compute_dtype))
        folded_params.append(jnp.tile(b, (1, fold)))          # stays f32

    if x.dtype != compute_dtype:
        # NOTE: this is an extra HBM pass; prefer producing x in
        # compute_dtype upstream (only matters for a mem-bound kernel).
        x = x.astype(compute_dtype)

    # ---- tile sizing -------------------------------------------------------
    fr_min = pl.cdiv(batch, fold)             # folded rows needed
    fr_aligned = _round_up(fr_min, 8)

    # Per-folded-row live VMEM: double-buffered x & out blocks plus ~3 live
    # whole-tile f32 intermediates (acc / h) from the unrolled MLP.
    row_bytes = 2 * in_w * cdt_size + 2 * out_w * 4 + 3 * hid_w * 4
    weight_bytes = 2 * sum(int(p.size) * p.dtype.itemsize
                           for p in folded_params)

    vmem_limit = _vmem_limit_bytes()
    usable = max(row_bytes * 8, vmem_limit - weight_bytes - (2 << 20))
    tbf_vmem = max(8, (usable // row_bytes) // 8 * 8)
    x_tile_target = 8 * 2**20                 # 2-8 MiB x tile amortizes the
    tbf_xtile = max(8, (x_tile_target // (in_w * cdt_size)) // 8 * 8)
    tbf = min(tbf_vmem, tbf_xtile, fr_aligned)

    if block_rows is not None:
        tbf = min(max(8, _round_up(pl.cdiv(block_rows, fold), 8)), fr_aligned)

    # Keep >= 2 grid steps when there is enough work so the "parallel" batch
    # axis can actually split across the two v7x TensorCores.
    if tbf >= fr_aligned and fr_aligned >= 16:
        tbf = _round_up(pl.cdiv(fr_aligned, 2), 8)

    num_tiles = pl.cdiv(fr_aligned, tbf)
    tbf = _round_up(pl.cdiv(fr_aligned, num_tiles), 8)   # balance tiles
    fr_p = num_tiles * tbf
    batch_p = fr_p * fold

    # ---- fold + (only-if-needed) pad ---------------------------------------
    if batch_p != batch:
        # Zero-cost for already tile-aligned batches; at most one extra pass
        # over x otherwise (previously padding triggered for nearly every
        # batch since the target was a multiple of the full tile).
        x = jnp.pad(x, ((0, batch_p - batch), (0, 0)))
    xf = x.reshape(fr_p, in_w)                # free contiguous reinterpretation

    # ---- specs / call -------------------------------------------------------
    def const_spec(shape):
        nblock = (0,) * len(shape)
        return pl.BlockSpec(shape, lambda i, _nb=nblock: _nb)   # VMEM-resident

    in_specs = [pl.BlockSpec((tbf, in_w), lambda i: (i, 0))]
    in_specs += [const_spec(p.shape) for p in folded_params]
    out_spec = pl.BlockSpec((tbf, out_w), lambda i: (i, 0))

    out = pl.pallas_call(
        _make_kernel(num_hidden_layers, compute_dtype),
        out_shape=jax.ShapeDtypeStruct((fr_p, out_w), jnp.float32),
        grid=(num_tiles,),
        in_specs=in_specs,
        out_specs=out_spec,
        compiler_params=pltpu.CompilerParams(
            dimension_semantics=("parallel",),
            vmem_limit_bytes=vmem_limit),
    )(xf, *folded_params)

    # Un-interleave the folded (mean, std) pairs: free contiguous reshape.
    out = out.reshape(batch_p, out_features)[:batch]
    mean = out[:, 0]    # .squeeze(-1) equivalent
    std = out[:, 1]
    return mean, std


# ------------------------- parameter construction --------------------------
def init_params(key, input_size, hidden_size, num_layers):
    """Deterministic init of the sequentialModel1D parameters.

    Layers: input_size -> hidden_size (xL, ELU) -> 2
    Weights stored as (in, out); biases as (1, out).
    """
    sizes = [input_size] + [hidden_size] * num_layers + [2]
    params = []
    for i in range(len(sizes) - 1):
        key, wk, bk = jax.random.split(key, 3)
        fan_in = sizes[i]
        scale = 1.0 / float(fan_in) ** 0.5
        w = jax.random.uniform(
            wk, (sizes[i], sizes[i + 1]), jnp.float32, -scale, scale)
        b = jax.random.uniform(
            bk, (1, sizes[i + 1]), jnp.float32, -scale, scale)
        params += [w, b]
    return params


# ----------------------------- reference ----------------------------------
def reward_model_ref(x, params):
    num_hidden_layers = len(params) // 2 - 1
    h = x
    for i in range(num_hidden_layers):
        h = _elu(h @ params[2 * i] + params[2 * i + 1])
    o = h @ params[-2] + params[-1]
    return o[:, 0], jnp.exp(o[:, 1])


# ------------------------------- main --------------------------------------
if __name__ == "__main__":
    cfg = Config()
    batch = 300          # deliberately not tile-aligned -> exercises padding
    input_size = 32

    key = jax.random.PRNGKey(0)
    key, xk = jax.random.split(key)
    x = jax.random.normal(xk, (batch, input_size), jnp.float32)
    params = init_params(key, input_size, cfg.hiddenSize, cfg.numLayers)

    mean_ref, std_ref = reward_model_ref(x, params)

    # 1) Auto settings (lane fold + large-tile heuristics), f32.
    mean, std = reward_model_forward(x, params)
    jax.block_until_ready((mean, std))
    assert mean.shape == (batch,) and std.shape == (batch,)
    assert jnp.allclose(mean, mean_ref, atol=2e-4, rtol=2e-4)
    assert jnp.allclose(std, std_ref, atol=2e-4, rtol=2e-4)

    # 2) Forced multi-tile grid + explicit 4x fold (exercises the pipelined
    #    grid path with VMEM-resident block-diagonal weights).
    mean2, std2 = reward_model_forward(x, params, fold=4, block_rows=64)
    jax.block_until_ready((mean2, std2))
    assert jnp.allclose(mean2, mean_ref, atol=2e-4, rtol=2e-4)
    assert jnp.allclose(std2, std_ref, atol=2e-4, rtol=2e-4)

    # 3) bf16-input path: x already arrives as bf16 (no wrapper cast pass);
    #    hidden activations are bf16 between layers (documented deviation
    #    from the f32 PyTorch reference), hence the loose tolerance.
    mean_bf, std_bf = reward_model_forward(x.astype(jnp.bfloat16), params)
    jax.block_until_ready((mean_bf, std_bf))
    assert jnp.allclose(mean_bf, mean_ref, atol=1e-1, rtol=1e-1)
    assert jnp.allclose(std_bf, std_ref, atol=1e-1, rtol=1e-1)

    # TODO(synk): torch.distributions.Normal itself has no Pallas equivalent;
    # the kernel returns its (loc, scale) parameters.
    print("KERNEL_OK")
</pallas_src>

<mosaic_0001>
module attributes {stable_mosaic.version = 11 : i64} {
  func.func @kernel(%arg0: i32, %arg1: memref<24x256xf32, #tpu.memory_space<vmem>>, %arg2: memref<256x256xf32, #tpu.memory_space<vmem>>, %arg3: memref<1x256xf32, #tpu.memory_space<vmem>>, %arg4: memref<256x256xf32, #tpu.memory_space<vmem>>, %arg5: memref<1x256xf32, #tpu.memory_space<vmem>>, %arg6: memref<256x16xf32, #tpu.memory_space<vmem>>, %arg7: memref<1x16xf32, #tpu.memory_space<vmem>>, %arg8: memref<24x16xf32, #tpu.memory_space<vmem>>) attributes {dimension_semantics = [#tpu.dimension_semantics<parallel>], iteration_bounds = array<i64: 2>, scalar_prefetch = 0 : i64, scratch_operands = 0 : i64, tpu.core_type = #tpu.core_type<tc>, window_params = [{transform_indices = @transform_0, window_bounds = array<i64: 24, 256>}, {pipeline_mode = #tpu.pipeline_mode<synchronous>, transform_indices = @transform_1, window_bounds = array<i64: 256, 256>}, {pipeline_mode = #tpu.pipeline_mode<synchronous>, transform_indices = @transform_2, window_bounds = array<i64: 1, 256>}, {pipeline_mode = #tpu.pipeline_mode<synchronous>, transform_indices = @transform_3, window_bounds = array<i64: 256, 256>}, {pipeline_mode = #tpu.pipeline_mode<synchronous>, transform_indices = @transform_4, window_bounds = array<i64: 1, 256>}, {pipeline_mode = #tpu.pipeline_mode<synchronous>, transform_indices = @transform_5, window_bounds = array<i64: 256, 16>}, {pipeline_mode = #tpu.pipeline_mode<synchronous>, transform_indices = @transform_6, window_bounds = array<i64: 1, 16>}, {transform_indices = @transform_7, window_bounds = array<i64: 24, 16>}]} {
    %c0 = arith.constant 0 : index
    %c0_0 = arith.constant 0 : index
    %0 = vector.load %arg1[%c0, %c0_0] : memref<24x256xf32, #tpu.memory_space<vmem>>, vector<24x256xf32>
    %c0_1 = arith.constant 0 : index
    %c0_2 = arith.constant 0 : index
    %1 = vector.load %arg2[%c0_1, %c0_2] : memref<256x256xf32, #tpu.memory_space<vmem>>, vector<256x256xf32>
    %c0_3 = arith.constant 0 : index
    %c0_4 = arith.constant 0 : index
    %2 = vector.load %arg3[%c0_3, %c0_4] : memref<1x256xf32, #tpu.memory_space<vmem>>, vector<1x256xf32>
    %cst = arith.constant dense<0.000000e+00> : vector<24x256xf32>
    %3 = tpu.matmul %0, %1, %cst {dimension_numbers = #tpu.dot_dimension_numbers<[1], [0], [0], [1], [0, 0, 1, 1], [], []>} : vector<24x256xf32>, vector<256x256xf32>, vector<24x256xf32> -> vector<24x256xf32>
    %4 = vector.broadcast %2 : vector<1x256xf32> to vector<24x256xf32>
    %5 = arith.addf %3, %4 : vector<24x256xf32>
    %cst_5 = arith.constant 0.000000e+00 : f32
    %6 = vector.broadcast %cst_5 : f32 to vector<24x256xf32>
    %7 = arith.cmpf ogt, %5, %6 : vector<24x256xf32>
    %cst_6 = arith.constant 0.000000e+00 : f32
    %8 = vector.broadcast %cst_6 : f32 to vector<24x256xf32>
    %9 = arith.minimumf %5, %8 : vector<24x256xf32>
    %10 = math.exp %9 : vector<24x256xf32>
    %cst_7 = arith.constant 1.000000e+00 : f32
    %11 = vector.broadcast %cst_7 : f32 to vector<24x256xf32>
    %12 = arith.subf %10, %11 : vector<24x256xf32>
    %13 = arith.select %7, %5, %12 : vector<24x256xi1>, vector<24x256xf32>
    %c0_8 = arith.constant 0 : index
    %c0_9 = arith.constant 0 : index
    %14 = vector.load %arg4[%c0_8, %c0_9] : memref<256x256xf32, #tpu.memory_space<vmem>>, vector<256x256xf32>
    %c0_10 = arith.constant 0 : index
    %c0_11 = arith.constant 0 : index
    %15 = vector.load %arg5[%c0_10, %c0_11] : memref<1x256xf32, #tpu.memory_space<vmem>>, vector<1x256xf32>
    %cst_12 = arith.constant dense<0.000000e+00> : vector<24x256xf32>
    %16 = tpu.matmul %13, %14, %cst_12 {dimension_numbers = #tpu.dot_dimension_numbers<[1], [0], [0], [1], [0, 0, 1, 1], [], []>} : vector<24x256xf32>, vector<256x256xf32>, vector<24x256xf32> -> vector<24x256xf32>
    %17 = vector.broadcast %15 : vector<1x256xf32> to vector<24x256xf32>
    %18 = arith.addf %16, %17 : vector<24x256xf32>
    %cst_13 = arith.constant 0.000000e+00 : f32
    %19 = vector.broadcast %cst_13 : f32 to vector<24x256xf32>
    %20 = arith.cmpf ogt, %18, %19 : vector<24x256xf32>
    %cst_14 = arith.constant 0.000000e+00 : f32
    %21 = vector.broadcast %cst_14 : f32 to vector<24x256xf32>
    %22 = arith.minimumf %18, %21 : vector<24x256xf32>
    %23 = math.exp %22 : vector<24x256xf32>
    %cst_15 = arith.constant 1.000000e+00 : f32
    %24 = vector.broadcast %cst_15 : f32 to vector<24x256xf32>
    %25 = arith.subf %23, %24 : vector<24x256xf32>
    %26 = arith.select %20, %18, %25 : vector<24x256xi1>, vector<24x256xf32>
    %c0_16 = arith.constant 0 : index
    %c0_17 = arith.constant 0 : index
    %27 = vector.load %arg6[%c0_16, %c0_17] : memref<256x16xf32, #tpu.memory_space<vmem>>, vector<256x16xf32>
    %cst_18 = arith.constant dense<0.000000e+00> : vector<24x16xf32>
    %28 = tpu.matmul %26, %27, %cst_18 {dimension_numbers = #tpu.dot_dimension_numbers<[1], [0], [0], [1], [0, 0, 1, 1], [], []>} : vector<24x256xf32>, vector<256x16xf32>, vector<24x16xf32> -> vector<24x16xf32>
    %c0_19 = arith.constant 0 : index
    %c0_20 = arith.constant 0 : index
    %29 = vector.load %arg7[%c0_19, %c0_20] : memref<1x16xf32, #tpu.memory_space<vmem>>, vector<1x16xf32>
    %30 = vector.broadcast %29 : vector<1x16xf32> to vector<24x16xf32>
    %31 = arith.addf %28, %30 : vector<24x16xf32>
    %32 = tpu.iota {dimensions = array<i32: 1>} : vector<24x16xi32>
    %c2_i32 = arith.constant 2 : i32
    %c0_i32 = arith.constant 0 : i32
    %33 = arith.cmpi eq, %c2_i32, %c0_i32 : i32
    %c1_i32 = arith.constant 1 : i32
    %34 = arith.select %33, %c1_i32, %c2_i32 : i32
    %35 = vector.broadcast %34 : i32 to vector<24x16xi32>
    %36 = arith.remsi %32, %35 : vector<24x16xi32>
    %c0_i32_21 = arith.constant 0 : i32
    %37 = vector.broadcast %c0_i32_21 : i32 to vector<24x16xi32>
    %38 = arith.cmpi ne, %36, %37 : vector<24x16xi32>
    %c0_i32_22 = arith.constant 0 : i32
    %39 = vector.broadcast %c0_i32_22 : i32 to vector<24x16xi32>
    %40 = arith.cmpi slt, %36, %39 : vector<24x16xi32>
    %c0_i32_23 = arith.constant 0 : i32
    %41 = arith.cmpi slt, %34, %c0_i32_23 : i32
    %42 = vector.broadcast %41 : i1 to vector<24x16xi1>
    %43 = vector.broadcast %42 : vector<24x16xi1> to vector<24x16xi1>
    %44 = arith.xori %40, %43 : vector<24x16xi1>
    %45 = arith.andi %44, %38 : vector<24x16xi1>
    %46 = vector.broadcast %34 : i32 to vector<24x16xi32>
    %47 = arith.addi %36, %46 : vector<24x16xi32>
    %48 = arith.select %45, %47, %36 : vector<24x16xi1>, vector<24x16xi32>
    %c1_i32_24 = arith.constant 1 : i32
    %49 = vector.broadcast %c1_i32_24 : i32 to vector<24x16xi32>
    %50 = arith.cmpi eq, %48, %49 : vector<24x16xi32>
    %51 = math.exp %31 : vector<24x16xf32>
    %52 = arith.select %50, %51, %31 : vector<24x16xi1>, vector<24x16xf32>
    %c0_25 = arith.constant 0 : index
    %c0_26 = arith.constant 0 : index
    %53 = vector.load %arg8[%c0_25, %c0_26] : memref<24x16xf32, #tpu.memory_space<vmem>>, vector<24x16xf32>
    tpu.vector_store %arg8[%c0_25, %c0_26], %52 {strides = array<i32>} : memref<24x16xf32, #tpu.memory_space<vmem>>, vector<24x16xf32>,
    return
  }
  func.func @transform_0(%arg0: i32) -> (i32, i32) {
    %c0_i32 = arith.constant 0 : i32
    %c0_i32_0 = arith.constant 0 : i32
    return %arg0, %c0_i32 : i32, i32
  }
  func.func @transform_1(%arg0: i32) -> (i32, i32) {
    %c0_i32 = arith.constant 0 : i32
    %c0_i32_0 = arith.constant 0 : i32
    %c0_i32_1 = arith.constant 0 : i32
    return %c0_i32, %c0_i32_0 : i32, i32
  }
  func.func @transform_2(%arg0: i32) -> (i32, i32) {
    %c0_i32 = arith.constant 0 : i32
    %c0_i32_0 = arith.constant 0 : i32
    %c0_i32_1 = arith.constant 0 : i32
    return %c0_i32, %c0_i32_0 : i32, i32
  }
  func.func @transform_3(%arg0: i32) -> (i32, i32) {
    %c0_i32 = arith.constant 0 : i32
    %c0_i32_0 = arith.constant 0 : i32
    %c0_i32_1 = arith.constant 0 : i32
    return %c0_i32, %c0_i32_0 : i32, i32
  }
  func.func @transform_4(%arg0: i32) -> (i32, i32) {
    %c0_i32 = arith.constant 0 : i32
    %c0_i32_0 = arith.constant 0 : i32
    %c0_i32_1 = arith.constant 0 : i32
    return %c0_i32, %c0_i32_0 : i32, i32
  }
  func.func @transform_5(%arg0: i32) -> (i32, i32) {
    %c0_i32 = arith.constant 0 : i32
    %c0_i32_0 = arith.constant 0 : i32
    %c0_i32_1 = arith.constant 0 : i32
    return %c0_i32, %c0_i32_0 : i32, i32
  }
  func.func @transform_6(%arg0: i32) -> (i32, i32) {
    %c0_i32 = arith.constant 0 : i32
    %c0_i32_0 = arith.constant 0 : i32
    %c0_i32_1 = arith.constant 0 : i32
    return %c0_i32, %c0_i32_0 : i32, i32
  }
  func.func @transform_7(%arg0: i32) -> (i32, i32) {
    %c0_i32 = arith.constant 0 : i32
    %c0_i32_0 = arith.constant 0 : i32
    return %arg0, %c0_i32 : i32, i32
  }
}

</mosaic_0001>

<bundles_post_ra>
// kernel: tpu_custom_call.1
= control target key start
LH: loop header
LB: loop body
LE: loop exit
PB: predicated region body
PF: predicated region fallthrough
CT: control target
= control target key end

     0   :  { %12 = vsyncpa [#allocation3], 0  ;;  %s1601_s0 = inlined_call_operand.vmem [shape: f32[48,256], index: 0, kind: input, shape index: {}]   ;;  %s1602_s1 = inlined_call_operand.hbm [shape: f32[256,256], index: 1, kind: input, shape index: {}]   ;;  %s1603_s2 = inlined_call_operand.vmem [shape: f32[1,256], index: 2, kind: input, shape index: {}]   ;;  %s1604_s3 = inlined_call_operand.hbm [shape: f32[256,256], index: 3, kind: input, shape index: {}]   ;;  %s1605_s4 = inlined_call_operand.vmem [shape: f32[1,256], index: 4, kind: input, shape index: {}]   ;;  %s1606_s5 = inlined_call_operand.vmem [shape: f32[256,16], index: 5, kind: input, shape index: {}]   ;;  %s1607_s6 = inlined_call_operand.vmem [shape: f32[1,16], index: 6, kind: input, shape index: {}]   ;;  %s1608_s7 = inlined_call_operand.vmem [shape: f32[48,16], index: 7, kind: output, shape index: {}]  }
   0x1   :  { %13 = vsyncpa [#allocation5], 0  ;;  %s1358_s24 = smov 0  }
   0x2 LB: > { %s936_s25 = sadd.s32 4294967295, %s1312_s24   ;;  %p938_p0 = scmp.ge.s32.totalorder %s1312_s24, 1  ;;  %s1312_s24 = sphi %s1358_s24, %s19_s24  }
   0x3   : > { %p202_p1 = scmp.lt.s32.totalorder %s1312_s24, 3  ;;  %s1314_s26 = smov [#allocation2]  }
   0x4   : > { %s214_s27 = sshll.u32 %s1314_s26, 4  ;;  %p1372_p3 = scmp.eq.s32.totalorder %s936_s25, 0  ;;  %s215_s27 = int_to_ptr.vmem [resolvable:$true] %s214_s27 }
   0x5   : > { %p1366_p2 = pnand %p938_p0, %p202_p1  ;;  %s1315_s30 = smov [#allocation4]  }
   0x6   : > { %s1613_s29 = scalar_select %p1372_p3, 1, 0 }
   0x7   : > { %s1612_s28 = scalar_select %p1366_p2, 1, 0 }
   0x8   : > { %p1189_p4 = pneg %p1366_p2  ;;  %s230_s8 = sshll.u32 %s1315_s30, 4  ;;  %s1384_s8 = int_to_ptr.vmem [resolvable:$true] %s230_s8 }
   0x9   : > { %s1242_s12 = scalar_lea.hbm %s1602_s1, 8192 }
   0xa   : > { %p1380_p5 = pnand %p1372_p3, %p1189_p4  ;;  %p1243_p6 = scmp.ne.s32.totalorder %s1602_s1, %s1242_s12 }
   0xb   : > { %p1249_p10 = scmp.lt.u32.totalorder %s1242_s12, %s1602_s1 }
   0xc   : > { %p1244_p7 = pneg %p1380_p5 }
   0xe   : > { %p1245_p8 = pnand %p1244_p7, %p1243_p6 }
  0x10   : > { %p1246_p9 = pneg %p1245_p8 }
  0x12   : > { %p1251_p11 = pnand %p1249_p10, %p1246_p9 }
  0x14   : > { %1254 = shalt.err (!%p1251_p11)
}
  0x15   : > { %s1255_s17 = scalar_lea.vmem %s215_s27, 8192  ;;  %p1263_p1 = scmp.lt.s32.totalorder %s215_s27, %s215_s27 }
  0x16   : > { %p1256_p12 = scmp.ne.s32.totalorder %s215_s27, %s1255_s17  ;;  %p1264_p4 = scmp.lt.s32.totalorder %s1255_s17, %s1255_s17 }
  0x18   : > { %p1258_p13 = pnand %p1256_p12, %p1244_p7  ;;  %p1265_p3 = por %p1264_p4, %p1263_p1 }
  0x1a   : > { %p1259_p0 = pneg %p1258_p13 }
  0x1c   : > { %p1266_p2 = pnand %p1265_p3, %p1259_p0 }
  0x1e   : > { %1269 = shalt.err (!%p1266_p2)
}
  0x1f   : > { %s1316_s18 = smov 256   ;;  %s1317_s19 = smov 16  }
  0x20   : > { %1192 = dma.hbm_to_vmem [thread:$0]  (!%p1380_p5), %s1602_s1, 8192, %s215_s27, [#allocation3], %s1316_s18, %s1316_s18, %s1317_s19  }
  0x21   : > { %s1270_s26 = scalar_lea.hbm %s1604_s3, 8192 }
  0x22   : > { %p1271_p6 = scmp.ne.s32.totalorder %s1604_s3, %s1270_s26  ;;  %p1277_p8 = scmp.lt.u32.totalorder %s1270_s26, %s1604_s3 }
  0x24   : > { %p1273_p2 = pnand %p1271_p6, %p1244_p7 }
  0x26   : > { %p1274_p3 = pneg %p1273_p2 }
  0x28   : > { %p1279_p9 = pnand %p1277_p8, %p1274_p3 }
  0x2a   : > { %1282 = shalt.err (!%p1279_p9)
}
  0x2b   : > { %s1283_s27 = scalar_lea.vmem %s1384_s8, 8192  ;;  %p1291_p13 = scmp.lt.s32.totalorder %s1384_s8, %s1384_s8 }
  0x2c   : > { %p1284_p10 = scmp.ne.s32.totalorder %s1384_s8, %s1283_s27  ;;  %p1292_p0 = scmp.lt.s32.totalorder %s1283_s27, %s1283_s27 }
  0x2e   : > { %p1286_p11 = pnand %p1284_p10, %p1244_p7  ;;  %p1293_p1 = por %p1292_p0, %p1291_p13 }
  0x30   : > { %p1287_p12 = pneg %p1286_p11 }
  0x32   : > { %p1294_p4 = pnand %p1293_p1, %p1287_p12 }
  0x34   : > { %1297 = shalt.err (!%p1294_p4)
}
  0x35   : > { %1195 = dma.hbm_to_vmem [thread:$0]  (!%p1380_p5), %s1604_s3, 8192, %s1384_s8, [#allocation5], %s1316_s18, %s1316_s18, %s1317_s19  }
  0x36   : > { %p1615_p6 = scmp.ne.s32.totalorder %s1612_s28, 0 }
  0x37   : > { %p1616_p2 = scmp.ne.s32.totalorder (!%p1615_p6), %s1613_s29, 0 }
  0x38   : > { %265 = sbr.rel (%p1615_p6) target bundleno = 841 (0x349), region = 48 }
  0x3f   : > { %1303 = dma.done.wait (%p1616_p2), [#allocation3], 8192  }
  0x40   : > { %1305 = vsyncadd (%p1616_p2), [#allocation3], 4294959104 }
  0x41   : > { %1307 = dma.done.wait (%p1616_p2), [#allocation5], 8192  }
  0x42   : > { %1309 = vsyncadd (%p1616_p2), [#allocation5], 4294959104  ;;  %v322_v0 = vld [vmem:[#allocation2 + $0x8] sm:$0xff]  ;;  %v324_v1 = vld [vmem:[#allocation2 + $0x18] sm:$0xff]  ;;  %s302_s28 = smul.u32 3, %s936_s25  ;;  %vm854_vm13 = vcmask 130048  }
  0x43   : > { %v321_v2 = vld [vmem:[#allocation2] sm:$0xff]  ;;  %v1005_v3 = vpack.c.bf16 %v324_v1, %v322_v0  ;;  %v323_v4 = vld [vmem:[#allocation2 + $0x10] sm:$0xff]  ;;  %v326_v5 = vld [vmem:[#allocation2 + $0x28] sm:$0xff] }
  0x44   : > { %v328_v6 = vld [vmem:[#allocation2 + $0x38] sm:$0xff]  ;;  %v1007_v7 = vpack.c.bf16 %v323_v4, %v321_v2  ;;  %v325_v9 = vld [vmem:[#allocation2 + $0x20] sm:$0xff]  ;;  %v327_v10 = vld [vmem:[#allocation2 + $0x30] sm:$0xff]  ;;  %p303_p5 = scmp.lt.s32.totalorder %s302_s28, 5 }
  0x45   : > { %v1009_v8 = vpack.c.bf16 %v328_v6, %v326_v5  ;;  %v330_v11 = vld [vmem:[#allocation2 + $0x48] sm:$0xff]  ;;  %1006 = vmatprep.subr.bf16.mxu0 %v1005_v3  ;;  %v332_v12 = vld [vmem:[#allocation2 + $0x58] sm:$0xff]  ;;  %v1011_v13 = vpack.c.bf16 %v327_v10, %v325_v9  ;;  %v329_v15 = vld [vmem:[#allocation2 + $0x40] sm:$0xff] }
  0x46   : > { %1008 = vmatpush1.bf16.msra.mxu0 %v1007_v7  ;;  %v1013_v14 = vpack.c.bf16 %v332_v12, %v330_v11  ;;  %v331_v16 = vld [vmem:[#allocation2 + $0x50] sm:$0xff]  ;;  %v334_v17 = vld [vmem:[#allocation2 + $0x68] sm:$0xff]  ;;  %v336_v18 = vld [vmem:[#allocation2 + $0x78] sm:$0xff]  ;;  %s1618_s28 = smov (!%p303_p5, %s302_s28), 5 }
  0x47   : > { %1010 = vmatprep.subr.bf16.mxu0 %v1009_v8  ;;  %v1015_v19 = vpack.c.bf16 %v331_v16, %v329_v15  ;;  %v1017_v20 = vpack.c.bf16 %v336_v18, %v334_v17  ;;  %v333_v21 = vld [vmem:[#allocation2 + $0x60] sm:$0xff]  ;;  %v335_v22 = vld [vmem:[#allocation2 + $0x70] sm:$0xff]  ;;  %v338_v23 = vld [vmem:[#allocation2 + $0x88] sm:$0xff]  ;;  %s963_s25 = sshll.u32 %s1618_s28, 4  ;;  %s947_s22 = sshll.u32 %s1618_s28, 3 }
  0x48   : > { %v340_v24 = vld [vmem:[#allocation2 + $0x98] sm:$0xff]  ;;  %v1019_v25 = vpack.c.bf16 %v335_v22, %v333_v21  ;;  %v337_v27 = vld [vmem:[#allocation2 + $0x80] sm:$0xff]  ;;  %v339_v28 = vld [vmem:[#allocation2 + $0x90] sm:$0xff]  ;;  %s1451_s9 = scalar_lea.vmem %s1601_s0, %s963_s25  ;;  %s313_s30 = scalar_lea.vmem %s1608_s7, %s947_s22 }
  0x49   : > { %v1021_v26 = vpack.c.bf16 %v340_v24, %v338_v23  ;;  %v342_v29 = vld [vmem:[#allocation2 + $0xa8] sm:$0xff]  ;;  %v344_v30 = vld [vmem:[#allocation2 + $0xb8] sm:$0xff]  ;;  %v1023_v31 = vpack.c.bf16 %v339_v28, %v337_v27  ;;  %v341_v33 = vld [vmem:[#allocation2 + $0xa0] sm:$0xff] }
  0x4a   : > { %1012 = vmatpush1.bf16.msra.mxu0 %v1011_v13  ;;  %v1025_v32 = vpack.c.bf16 %v344_v30, %v342_v29  ;;  %v343_v34 = vld [vmem:[#allocation2 + $0xb0] sm:$0xff]  ;;  %v346_v35 = vld [vmem:[#allocation2 + $0xc8] sm:$0xff]  ;;  %v348_v36 = vld [vmem:[#allocation2 + $0xd8] sm:$0xff] }
  0x4b   : > { %1014 = vmatprep.subr.bf16.mxu0 %v1013_v14  ;;  %v1027_v37 = vpack.c.bf16 %v343_v34, %v341_v33  ;;  %v1029_v38 = vpack.c.bf16 %v348_v36, %v346_v35  ;;  %v345_v39 = vld [vmem:[#allocation2 + $0xc0] sm:$0xff]  ;;  %v347_v40 = vld [vmem:[#allocation2 + $0xd0] sm:$0xff]  ;;  %v316_v41 = vld [vmem:[%s1451_s9 + $0x8] sm:$0xff] }
  0x4c   : > { %v350_v42 = vld [vmem:[#allocation2 + $0xe8] sm:$0xff]  ;;  %v352_v43 = vld [vmem:[#allocation2 + $0xf8] sm:$0xff]  ;;  %461 = vmatprep.mubr.f32.mxu0 %v316_v41  ;;  %v349_v44 = vld [vmem:[#allocation2 + $0xe0] sm:$0xff]  ;;  %v1031_v48 = vpack.c.bf16 %v347_v40, %v345_v39 }
  0x4d   : > { %v351_v45 = vld [vmem:[#allocation2 + $0xf0] sm:$0xff]  ;;  %v517_v46 = vld [vmem:[#allocation4 + $0x8] sm:$0xff]  ;;  %v519_v47 = vld [vmem:[#allocation4 + $0x18] sm:$0xff]  ;;  %v1033_v54 = vpack.c.bf16 %v352_v43, %v350_v42 }
  0x4e   : > { %1016 = vmatpush1.bf16.msra.mxu0 %v1015_v19  ;;  %v354_v49 = vld [vmem:[#allocation2 + $0x108] sm:$0xff]  ;;  %v1069_v50 = vpack.c.bf16 %v519_v47, %v517_v46  ;;  %v516_v51 = vld [vmem:[#allocation4] sm:$0xff]  ;;  %v518_v52 = vld [vmem:[#allocation4 + $0x10] sm:$0xff]  ;;  %v1035_v0 = vpack.c.bf16 %v351_v45, %v349_v44 }
  0x4f   : > { %1018 = vmatprep.subr.bf16.mxu0 %v1017_v20  ;;  %v521_v53 = vld [vmem:[#allocation4 + $0x28] sm:$0xff]  ;;  %v1071_v55 = vpack.c.bf16 %v518_v52, %v516_v51  ;;  %v523_v56 = vld [vmem:[#allocation4 + $0x38] sm:$0xff]  ;;  %v520_v57 = vld [vmem:[#allocation4 + $0x20] sm:$0xff] }
  0x50   : > { %v522_v58 = vld [vmem:[#allocation4 + $0x30] sm:$0xff]  ;;  %v356_v59 = vld [vmem:[#allocation2 + $0x118] sm:$0xff]  ;;  %1070 = vmatprep.subr.bf16.mxu1 %v1069_v50  ;;  %v1073_v60 = vpack.c.bf16 %v523_v56, %v521_v53  ;;  %v525_v61 = vld [vmem:[#allocation4 + $0x48] sm:$0xff] }
  0x51   : > { %v527_v62 = vld [vmem:[#allocation4 + $0x58] sm:$0xff]  ;;  %1072 = vmatpush1.bf16.msra.mxu1 %v1071_v55  ;;  %v1075_v63 = vpack.c.bf16 %v522_v58, %v520_v57  ;;  %v353_v1 = vld [vmem:[#allocation2 + $0x100] sm:$0xff]  ;;  %v526_v4 = vld [vmem:[#allocation4 + $0x50] sm:$0xff]  ;;  %v1037_v5 = vpack.c.bf16 %v356_v59, %v354_v49 }
  0x52   : > { %1020 = vmatpush1.bf16.msra.mxu0 %v1019_v25  ;;  %1074 = vmatprep.subr.bf16.mxu1 %v1073_v60  ;;  %v1077_v2 = vpack.c.bf16 %v527_v62, %v525_v61  ;;  %v524_v3 = vld [vmem:[#allocation4 + $0x40] sm:$0xff]  ;;  %v355_v6 = vld [vmem:[#allocation2 + $0x110] sm:$0xff]  ;;  %v529_v7 = vld [vmem:[#allocation4 + $0x68] sm:$0xff] }
  0x53   : > { %1022 = vmatprep.subr.bf16.mxu0 %v1021_v26  ;;  %v531_v8 = vld [vmem:[#allocation4 + $0x78] sm:$0xff]  ;;  %v358_v9 = vld [vmem:[#allocation2 + $0x128] sm:$0xff]  ;;  %v1079_v11 = vpack.c.bf16 %v526_v4, %v524_v3  ;;  %v1039_v12 = vpack.c.bf16 %v355_v6, %v353_v1  ;;  %v357_v13 = vld [vmem:[#allocation2 + $0x120] sm:$0xff] }
  0x54   : > { %v360_v10 = vld [vmem:[#allocation2 + $0x138] sm:$0xff]  ;;  %v1081_v14 = vpack.c.bf16 %v531_v8, %v529_v7  ;;  %v528_v15 = vld [vmem:[#allocation4 + $0x60] sm:$0xff]  ;;  %v530_v16 = vld [vmem:[#allocation4 + $0x70] sm:$0xff] }
  0x55   : > { %1076 = vmatpush1.bf16.msra.mxu1 %v1075_v63  ;;  %v1041_v17 = vpack.c.bf16 %v360_v10, %v358_v9  ;;  %v359_v18 = vld [vmem:[#allocation2 + $0x130] sm:$0xff]  ;;  %v533_v19 = vld [vmem:[#allocation4 + $0x88] sm:$0xff]  ;;  %v535_v20 = vld [vmem:[#allocation4 + $0x98] sm:$0xff]  ;;  %v1083_v23 = vpack.c.bf16 %v530_v16, %v528_v15 }
  0x56   : > { %1024 = vmatpush1.bf16.msra.mxu0 %v1023_v31  ;;  %1078 = vmatprep.subr.bf16.mxu1 %v1077_v2  ;;  %v362_v21 = vld [vmem:[#allocation2 + $0x148] sm:$0xff]  ;;  %v364_v22 = vld [vmem:[#allocation2 + $0x158] sm:$0xff]  ;;  %v1043_v24 = vpack.c.bf16 %v359_v18, %v357_v13  ;;  %v361_v25 = vld [vmem:[#allocation2 + $0x140] sm:$0xff]  ;;  %v1085_v26 = vpack.c.bf16 %v535_v20, %v533_v19 }
  0x57   : > { %1026 = vmatprep.subr.bf16.mxu0 %v1025_v32  ;;  %v532_v27 = vld [vmem:[#allocation4 + $0x80] sm:$0xff]  ;;  %v534_v28 = vld [vmem:[#allocation4 + $0x90] sm:$0xff]  ;;  %v1045_v29 = vpack.c.bf16 %v364_v22, %v362_v21  ;;  %v537_v31 = vld [vmem:[#allocation4 + $0xa8] sm:$0xff] }
  0x58   : > { %v363_v30 = vld [vmem:[#allocation2 + $0x150] sm:$0xff]  ;;  %v539_v32 = vld [vmem:[#allocation4 + $0xb8] sm:$0xff]  ;;  %v366_v33 = vld [vmem:[#allocation2 + $0x168] sm:$0xff]  ;;  %v1087_v35 = vpack.c.bf16 %v534_v28, %v532_v27 }
  0x59   : > { %1080 = vmatpush1.bf16.msra.mxu1 %v1079_v11  ;;  %v368_v34 = vld [vmem:[#allocation2 + $0x178] sm:$0xff]  ;;  %v1047_v36 = vpack.c.bf16 %v363_v30, %v361_v25  ;;  %v536_v39 = vld [vmem:[#allocation4 + $0xa0] sm:$0xff]  ;;  %v538_v40 = vld [vmem:[#allocation4 + $0xb0] sm:$0xff] }
  0x5a   : > { %1028 = vmatpush1.bf16.msra.mxu0 %v1027_v37  ;;  %1082 = vmatprep.subr.bf16.mxu1 %v1081_v14  ;;  %v365_v37 = vld [vmem:[#allocation2 + $0x160] sm:$0xff]  ;;  %v1049_v41 = vpack.c.bf16 %v368_v34, %v366_v33  ;;  %v367_v42 = vld [vmem:[#allocation2 + $0x170] sm:$0xff]  ;;  %v541_v43 = vld [vmem:[#allocation4 + $0xc8] sm:$0xff]  ;;  %v1091_v47 = vpack.c.bf16 %v538_v40, %v536_v39 }
  0x5b   : > { %1030 = vmatprep.subr.bf16.mxu0 %v1029_v38  ;;  %v1089_v38 = vpack.c.bf16 %v539_v32, %v537_v31  ;;  %v543_v44 = vld [vmem:[#allocation4 + $0xd8] sm:$0xff]  ;;  %v370_v45 = vld [vmem:[#allocation2 + $0x188] sm:$0xff]  ;;  %v369_v49 = vld [vmem:[#allocation2 + $0x180] sm:$0xff] }
  0x5c   : > { %v372_v46 = vld [vmem:[#allocation2 + $0x198] sm:$0xff]  ;;  %v1093_v50 = vpack.c.bf16 %v543_v44, %v541_v43  ;;  %v540_v51 = vld [vmem:[#allocation4 + $0xc0] sm:$0xff]  ;;  %v542_v52 = vld [vmem:[#allocation4 + $0xd0] sm:$0xff] }
  0x5d   : > { %1084 = vmatpush1.bf16.msra.mxu1 %v1083_v23  ;;  %v1053_v53 = vpack.c.bf16 %v372_v46, %v370_v45  ;;  %v545_v55 = vld [vmem:[#allocation4 + $0xe8] sm:$0xff]  ;;  %v547_v56 = vld [vmem:[#allocation4 + $0xf8] sm:$0xff]  ;;  %v1095_v59 = vpack.c.bf16 %v542_v52, %v540_v51  ;;  %v373_v61 = vld [vmem:[#allocation2 + $0x1a0] sm:$0xff] }
  0x5e   : > { %1032 = vmatpush1.bf16.msra.mxu0 %v1031_v48  ;;  %1086 = vmatprep.subr.bf16.mxu1 %v1085_v26  ;;  %v1051_v48 = vpack.c.bf16 %v367_v42, %v365_v37  ;;  %v374_v57 = vld [vmem:[#allocation2 + $0x1a8] sm:$0xff]  ;;  %v376_v58 = vld [vmem:[#allocation2 + $0x1b8] sm:$0xff]  ;;  %v1097_v62 = vpack.c.bf16 %v547_v56, %v545_v55  ;;  %v544_v63 = vld [vmem:[#allocation4 + $0xe0] sm:$0xff] }
  0x5f   : > { %1034 = vmatprep.subr.bf16.mxu0 %v1033_v54  ;;  %v371_v54 = vld [vmem:[#allocation2 + $0x190] sm:$0xff]  ;;  %v1057_v1 = vpack.c.bf16 %v376_v58, %v374_v57  ;;  %v549_v3 = vld [vmem:[#allocation4 + $0x108] sm:$0xff]  ;;  %v551_v4 = vld [vmem:[#allocation4 + $0x118] sm:$0xff] }
  0x60   : > { %v1055_v60 = vpack.c.bf16 %v371_v54, %v369_v49  ;;  %v375_v2 = vld [vmem:[#allocation2 + $0x1b0] sm:$0xff]  ;;  %v380_v6 = vld [vmem:[#allocation2 + $0x1d8] sm:$0xff]  ;;  %v377_v9 = vld [vmem:[#allocation2 + $0x1c0] sm:$0xff]  ;;  %v1101_v10 = vpack.c.bf16 %v551_v4, %v549_v3 }
  0x61   : > { %1088 = vmatpush1.bf16.msra.mxu1 %v1087_v35  ;;  %v1059_v8 = vpack.c.bf16 %v375_v2, %v373_v61  ;;  %v548_v11 = vld [vmem:[#allocation4 + $0x100] sm:$0xff]  ;;  %v379_v14 = vld [vmem:[#allocation2 + $0x1d0] sm:$0xff]  ;;  %v553_v15 = vld [vmem:[#allocation4 + $0x128] sm:$0xff] }
  0x62   : > { %1036 = vmatpush1.bf16.msra.mxu0 %v1035_v0  ;;  %1090 = vmatprep.subr.bf16.mxu1 %v1089_v38  ;;  %v546_v0 = vld [vmem:[#allocation4 + $0xf0] sm:$0xff]  ;;  %v555_v16 = vld [vmem:[#allocation4 + $0x138] sm:$0xff]  ;;  %v1063_v20 = vpack.c.bf16 %v379_v14, %v377_v9  ;;  %v381_v21 = vld [vmem:[#allocation2 + $0x1e0] sm:$0xff] }
  0x63   : > { %1038 = vmatprep.subr.bf16.mxu0 %v1037_v5  ;;  %v378_v5 = vld [vmem:[#allocation2 + $0x1c8] sm:$0xff]  ;;  %v1099_v7 = vpack.c.bf16 %v546_v0, %v544_v63  ;;  %v384_v18 = vld [vmem:[#allocation2 + $0x1f8] sm:$0xff]  ;;  %v1105_v22 = vpack.c.bf16 %v555_v16, %v553_v15  ;;  %v552_v23 = vld [vmem:[#allocation4 + $0x120] sm:$0xff] }
  0x64   : > { %v1061_v13 = vpack.c.bf16 %v380_v6, %v378_v5  ;;  %v383_v26 = vld [vmem:[#allocation2 + $0x1f0] sm:$0xff]  ;;  %v557_v27 = vld [vmem:[#allocation4 + $0x148] sm:$0xff]  ;;  %v559_v28 = vld [vmem:[#allocation4 + $0x158] sm:$0xff] }
  0x65   : > { %1092 = vmatpush1.bf16.msra.mxu1 %v1091_v47  ;;  %v1067_v30 = vpack.c.bf16 %v383_v26, %v381_v21  ;;  %v1109_v31 = vpack.c.bf16 %v559_v28, %v557_v27  ;;  %v315_v32 = vld [vmem:[%s1451_s9] sm:$0xff]  ;;  %v318_v33 = vld [vmem:[%s1451_s9 + $0x18] sm:$0xff]  ;;  %v317_v34 = vld [vmem:[%s1451_s9 + $0x10] sm:$0xff]  ;;  %v387_v21 = vlaneseq }
  0x66   : > { %1040 = vmatpush1.bf16.msra.mxu0 %v1039_v12  ;;  %1094 = vmatprep.subr.bf16.mxu1 %v1093_v50  ;;  %v550_v12 = vld [vmem:[#allocation4 + $0x110] sm:$0xff]  ;;  %v320_v35 = vld [vmem:[%s1451_s9 + $0x28] sm:$0xff]  ;;  %v556_v37 = vld [vmem:[#allocation4 + $0x140] sm:$0xff] }
  0x67   : > { %1042 = vmatprep.subr.bf16.mxu0 %v1041_v17  ;;  %v382_v17 = vld [vmem:[#allocation2 + $0x1e8] sm:$0xff]  ;;  %v1103_v19 = vpack.c.bf16 %v550_v12, %v548_v11  ;;  %v558_v38 = vld [vmem:[#allocation4 + $0x150] sm:$0xff]  ;;  %v560_v43 = vld [vmem:[#allocation4 + $0x160] sm:$0xff] }
  0x68   : > { %v1065_v25 = vpack.c.bf16 %v384_v18, %v382_v17  ;;  %v1111_v39 = vpack.c.bf16 %v558_v38, %v556_v37  ;;  %v561_v40 = vld [vmem:[#allocation4 + $0x168] sm:$0xff]  ;;  %v562_v44 = vld [vmem:[#allocation4 + $0x170] sm:$0xff]  ;;  %v567_v47 = vld [vmem:[#allocation4 + $0x198] sm:$0xff] }
  0x69   : > { %1096 = vmatpush1.bf16.msra.mxu1 %v1095_v59  ;;  %v1115_v45 = vpack.c.bf16 %v562_v44, %v560_v43  ;;  %v565_v46 = vld [vmem:[#allocation4 + $0x188] sm:$0xff]  ;;  %v564_v49 = vld [vmem:[#allocation4 + $0x180] sm:$0xff]  ;;  %v566_v50 = vld [vmem:[#allocation4 + $0x190] sm:$0xff] }
  0x6a   : > { %1044 = vmatpush1.bf16.msra.mxu0 %v1043_v24  ;;  %1098 = vmatprep.subr.bf16.mxu1 %v1097_v62  ;;  %v554_v24 = vld [vmem:[#allocation4 + $0x130] sm:$0xff]  ;;  %v1119_v51 = vpack.c.bf16 %v566_v50, %v564_v49  ;;  %v569_v52 = vld [vmem:[#allocation4 + $0x1a8] sm:$0xff]  ;;  %v568_v55 = vld [vmem:[#allocation4 + $0x1a0] sm:$0xff] }
  0x6b   : > { %1046 = vmatprep.subr.bf16.mxu0 %v1045_v29  ;;  %v1107_v29 = vpack.c.bf16 %v554_v24, %v552_v23  ;;  %v570_v56 = vld [vmem:[#allocation4 + $0x1b0] sm:$0xff]  ;;  %v573_v58 = vld [vmem:[#allocation4 + $0x1c8] sm:$0xff]  ;;  %v575_v59 = vld [vmem:[#allocation4 + $0x1d8] sm:$0xff] }
  0x6c   : > { %v1123_v57 = vpack.c.bf16 %v570_v56, %v568_v55  ;;  %v572_v61 = vld [vmem:[#allocation4 + $0x1c0] sm:$0xff]  ;;  %v574_v62 = vld [vmem:[#allocation4 + $0x1d0] sm:$0xff]  ;;  %v577_v0 = vld [vmem:[#allocation4 + $0x1e8] sm:$0xff] }
  0x6d   : > { %1100 = vmatpush1.bf16.msra.mxu1 %v1099_v7  ;;  %v1127_v63 = vpack.c.bf16 %v574_v62, %v572_v61  ;;  %v576_v2 = vld [vmem:[#allocation4 + $0x1e0] sm:$0xff]  ;;  %v578_v4 = vld [vmem:[#allocation4 + $0x1f0] sm:$0xff]  ;;  %v728_v7 = vld [vmem:[%s1606_s5 + $0x88] sm:$0xff] }
  0x6e   : > { %1048 = vmatpush1.bf16.msra.mxu0 %v1047_v36  ;;  %1102 = vmatprep.subr.bf16.mxu1 %v1101_v10  ;;  %v319_v36 = vld [vmem:[%s1451_s9 + $0x20] sm:$0xff]  ;;  %v1131_v5 = vpack.c.bf16 %v578_v4, %v576_v2  ;;  %v712_v10 = vld [vmem:[%s1606_s5 + $0x8] sm:$0xff]  ;;  %v729_v11 = vld [vmem:[%s1606_s5 + $0x90] sm:$0xff] }
  0x6f   : > { %1050 = vmatprep.subr.bf16.mxu0 %v1049_v41  ;;  %v563_v41 = vld [vmem:[#allocation4 + $0x178] sm:$0xff]  ;;  %v727_v6 = vld [vmem:[%s1606_s5 + $0x80] sm:$0xff]  ;;  %v713_v15 = vld [vmem:[%s1606_s5 + $0x10] sm:$0xff] }
  0x70   : > { %v1113_v42 = vpack.c.bf16 %v563_v41, %v561_v40  ;;  %v1133_v9 = vpack.c.bf16 %v728_v7, %v727_v6  ;;  %v730_v12 = vld [vmem:[%s1606_s5 + $0x98] sm:$0xff]  ;;  %v731_v17 = vld [vmem:[%s1606_s5 + $0xa0] sm:$0xff]  ;;  %v732_v18 = vld [vmem:[%s1606_s5 + $0xa8] sm:$0xff] }
  0x71   : > { %1104 = vmatpush1.bf16.msra.mxu1 %v1103_v19  ;;  %v1479_v14 = vpack.c.bf16 %v730_v12, %v729_v11  ;;  %v714_v16 = vld [vmem:[%s1606_s5 + $0x18] sm:$0xff]  ;;  %v385_v24 = vld [vmem:[%s1603_s2] sm:$0x3]  ;;  %v716_v7 = vld [vmem:[%s1606_s5 + $0x28] sm:$0xff] }
  0x72   : > { %1052 = vmatpush1.bf16.msra.mxu0 %v1051_v48  ;;  %1106 = vmatprep.subr.bf16.mxu1 %v1105_v22  ;;  %v1117_v48 = vpack.c.bf16 %v567_v47, %v565_v46  ;;  %v1494_v19 = vpack.c.bf16 %v714_v16, %v713_v15  ;;  %v1502_v22 = vshrl.u32 %v387_v21, 7  ;;  %v715_v6 = vld [vmem:[%s1606_s5 + $0x20] sm:$0xff]  ;;  %v717_v12 = vld [vmem:[%s1606_s5 + $0x30] sm:$0xff]  ;;  %v736_v16 = vld [vmem:[%s1606_s5 + $0xc8] sm:$0xff] }
  0x73   : > { %1054 = vmatprep.subr.bf16.mxu0 %v1053_v53  ;;  %v571_v53 = vld [vmem:[#allocation4 + $0x1b8] sm:$0xff]  ;;  %v735_v15 = vld [vmem:[%s1606_s5 + $0xc0] sm:$0xff] }
  0x74   : > { %v1121_v54 = vpack.c.bf16 %v571_v53, %v569_v52  ;;  %v389_v23 = vsub.s32 0, %v1502_v22 }
  0x75   : > { %1108 = vmatpush1.bf16.msra.mxu1 %v1107_v29 }
  0x76   : > { %1056 = vmatpush1.bf16.msra.mxu0 %v1055_v60  ;;  %1110 = vmatprep.subr.bf16.mxu1 %v1109_v31  ;;  %v1125_v60 = vpack.c.bf16 %v575_v59, %v573_v58  ;;  %v390_v26 = vrot.slane %v385_v24, %v389_v23 }
  0x77   : > { %1058 = vmatprep.subr.bf16.mxu0 %v1057_v1  ;;  %v579_v1 = vld [vmem:[#allocation4 + $0x1f8] sm:$0xff] }
  0x78   : > { %v1129_v3 = vpack.c.bf16 %v579_v1, %v577_v0 }
  0x79   : > { %1112 = vmatpush1.bf16.msra.mxu1 %v1111_v39 }
  0x7a   : > { %1060 = vmatpush1.bf16.msra.mxu0 %v1059_v8  ;;  %1114 = vmatprep.subr.bf16.mxu1 %v1113_v42  ;;  %v711_v8 = vld [vmem:[%s1606_s5] sm:$0xff] }
  0x7b   : > { %1062 = vmatprep.subr.bf16.mxu0 %v1061_v13  ;;  %v1477_v13 = vpack.c.bf16 %v712_v10, %v711_v8  ;;  %v1143_v8 = vpack.c.bf16 %v716_v7, %v715_v6  ;;  %v734_v10 = vld [vmem:[%s1606_s5 + $0xb8] sm:$0xff] }
  0x7d   : > { %1116 = vmatpush1.bf16.msra.mxu1 %v1115_v45 }
  0x7e   : > { %1064 = vmatpush1.bf16.msra.mxu0 %v1063_v20  ;;  %1118 = vmatprep.subr.bf16.mxu1 %v1117_v48  ;;  %v1497_v20 = vpack.c.bf16 %v732_v18, %v731_v17  ;;  %v1149_v17 = vpack.c.bf16 %v736_v16, %v735_v15  ;;  %v719_v18 = vld [vmem:[%s1606_s5 + $0x40] sm:$0xff] }
  0x7f   : > { %1066 = vmatprep.subr.bf16.mxu0 %v1065_v25  ;;  %v393_v25 = vsub.s32 1, %v1502_v22 }
  0x81   : > { %1120 = vmatpush1.bf16.msra.mxu1 %v1119_v51  ;;  %v394_v27 = vrot.slane %v385_v24, %v393_v25  ;;  %v737_v24 = vld [vmem:[%s1606_s5 + $0xd0] sm:$0xff] }
  0x82   : > { %1068 = vmatpush1.bf16.msra.mxu0 %v1067_v30  ;;  %1122 = vmatprep.subr.bf16.mxu1 %v1121_v54 }
  0x83   : > { %1134 = vmatprep.subr.bf16.mxu0 %v1133_v9 }
  0x85   : > { %462 = vmatmul.mubr.f32.vlgmr.msra.gmra.mrb[0].mxu0 %v315_v32  ;;  %1124 = vmatpush1.bf16.msra.mxu1 %v1123_v57 }
  0x86   : > { %467 = vmatprep.mubr.f32.mxu0 %v318_v33  ;;  %1126 = vmatprep.subr.bf16.mxu1 %v1125_v60 }
  0x87   : > { %1136 = vmatpush3.bf16.msra.mxu0 %v1477_v13 }
  0x88   : > { %1138 = vmatprep.subr.bf16.mxu0 %v1479_v14 }
  0x89   : > { %468 = vmatmul.mubr.f32.gmra.mrb[2].mxu0 %v317_v34  ;;  %1128 = vmatpush1.bf16.msra.mxu1 %v1127_v63 }
  0x8a   : > { %473 = vmatprep.mubr.f32.mxu0 %v320_v35  ;;  %1130 = vmatprep.subr.bf16.mxu1 %v1129_v3 }
  0x8b   : > { %1140 = vmatpush3.bf16.msra.mxu0 %v1494_v19 }
  0x8c   : > { %1142 = vmatprep.subr.bf16.mxu0 %v1497_v20 }
  0x8d   : > { %474 = vmatmul.mubr.f32.gmra.mrb[4].mxu0 %v319_v36  ;;  %1132 = vmatpush1.bf16.msra.mxu1 %v1131_v5 }
  0x8e   : > { %1165 = vmatprep.subr.bf16.mxu1 %v1133_v9  ;;  %v733_v9 = vld [vmem:[%s1606_s5 + $0xb0] sm:$0xff] }
  0x8f   : > { %1144 = vmatpush3.bf16.msra.mxu0 %v1143_v8  ;;  %v1145_v11 = vpack.c.bf16 %v734_v10, %v733_v9 }
  0x91   : > { %1146 = vmatprep.subr.bf16.mxu0 %v1145_v11 }
 0x158   : > { %v463_v28 = vpop.f32.mrb[0].mxu0 }
 0x159   : > { %v464_v29 = vadd.f32 %v463_v28, %v390_v26  ;;  %v465_v30 = vpop.f32.mrb[1].mxu0  ;;  %v721_v28 = vld [vmem:[%s1606_s5 + $0x50] sm:$0xff] }
 0x15a   : > { %v466_v31 = vadd.f32 %v465_v30, %v394_v27 }
 0x15b   : > { %v486_v32 = vmin.f32 %v464_v29, 0.0  ;;  %vm480_vm1 = vcmp.gt.f32.partialorder %v464_v29, 0.0 }
 0x15c   : > { %v487_v33 = vmin.f32 %v466_v31, 0.0  ;;  %v469_v34 = vpop.f32.mrb[2].mxu0  ;;  %vm481_vm0 = vcmp.gt.f32.partialorder %v466_v31, 0.0 }
 0x15d   : > { %v492_v35 = vmul.f32 1.442695, %v486_v32  ;;  %v470_v36 = vadd.f32 %v469_v34, %v390_v26  ;;  %v471_v37 = vpop.f32.mrb[3].mxu0  ;;  %v740_v32 = vld [vmem:[%s1606_s5 + $0xe8] sm:$0xff]  ;;  %v723_v34 = vld [vmem:[%s1606_s5 + $0x60] sm:$0xff] }
 0x15e   : > { %v494_v38 = vmul.f32 1.442695, %v487_v33  ;;  %v472_v39 = vadd.f32 %v471_v37, %v394_v27  ;;  %v741_v37 = vld [vmem:[%s1606_s5 + $0xf0] sm:$0xff] }
 0x15f   : > { %1212 = vpow2.f32 %v492_v35  ;;  %v488_v40 = vmin.f32 %v470_v36, 0.0  ;;  %vm482_vm3 = vcmp.gt.f32.partialorder %v470_v36, 0.0  ;;  %v724_v35 = vld [vmem:[%s1606_s5 + $0x68] sm:$0xff] }
 0x160   : > { %1214 = vpow2.f32 %v494_v38  ;;  %v489_v41 = vmin.f32 %v472_v39, 0.0  ;;  %v475_v42 = vpop.f32.mrb[4].mxu0  ;;  %vm483_vm2 = vcmp.gt.f32.partialorder %v472_v39, 0.0  ;;  %v742_v38 = vld [vmem:[%s1606_s5 + $0xf8] sm:$0xff] }
 0x161   : > { %v496_v43 = vmul.f32 1.442695, %v488_v40  ;;  %v476_v44 = vadd.f32 %v475_v42, %v390_v26  ;;  %v477_v45 = vpop.f32.mrb[5].mxu0  ;;  %v738_v26 = vld [vmem:[%s1606_s5 + $0xd8] sm:$0xff]  ;;  %v725_v40 = vld [vmem:[%s1606_s5 + $0x70] sm:$0xff] }
 0x162   : > { %v498_v46 = vmul.f32 1.442695, %v489_v41  ;;  %v478_v47 = vadd.f32 %v477_v45, %v394_v27  ;;  %v1153_v27 = vpack.c.bf16 %v738_v26, %v737_v24  ;;  %v726_v41 = vld [vmem:[%s1606_s5 + $0x78] sm:$0xff]  ;;  %v960_v26 = vld [vmem:[%s1607_s6] ss:$0 sm:$0xff] }
 0x163   : > { %1216 = vpow2.f32 %v496_v43  ;;  %v490_v48 = vmin.f32 %v476_v44, 0.0  ;;  %vm484_vm5 = vcmp.gt.f32.partialorder %v476_v44, 0.0  ;;  %v1163_v42 = vpack.c.bf16 %v726_v41, %v725_v40  ;;  %v580_v43 = vld [vmem:[%s1605_s4] sm:$0x3] }
 0x164   : > { %1218 = vpow2.f32 %v498_v46  ;;  %v491_v49 = vmin.f32 %v478_v47, 0.0  ;;  %vm485_vm4 = vcmp.gt.f32.partialorder %v478_v47, 0.0  ;;  %v589_v45 = vrot.slane %v580_v43, %v393_v25 }
 0x165   : > { %v500_v50 = vmul.f32 1.442695, %v490_v48 }
 0x166   : > { %v502_v51 = vmul.f32 1.442695, %v491_v49 }
 0x167   : > { %1220 = vpow2.f32 %v500_v50 }
 0x168   : > { %1222 = vpow2.f32 %v502_v51 }
 0x169   : > { %v1213_v52 = vpop.eup %1212 }
 0x16a   : > { %v1215_v53 = vpop.eup %1214  ;;  %v948_v54 = vadd.f32 -1.0, %v1213_v52 }
 0x16b   : > { %v949_v55 = vadd.f32 -1.0, %v1215_v53 }
 0x16c   : > { %v510_v59 = vsel %vm480_vm1, %v464_v29, %v948_v54  ;;  %v722_v29 = vld [vmem:[%s1606_s5 + $0x58] sm:$0xff] }
 0x16d   : > { %v1217_v56 = vpop.eup %1216  ;;  %v511_v57 = vsel %vm481_vm0, %v466_v31, %v949_v55  ;;  %v1155_v30 = vpack.c.bf16 %v722_v29, %v721_v28  ;;  %v739_v31 = vld [vmem:[%s1606_s5 + $0xe0] sm:$0xff] }
 0x16e   : > { %v1219_v58 = vpop.eup %1218  ;;  %656 = vmatprep.mubr.f32.mxu1 %v511_v57  ;;  %v950_v60 = vadd.f32 -1.0, %v1217_v56  ;;  %v1157_v33 = vpack.c.bf16 %v740_v32, %v739_v31 }
 0x16f   : > { %657 = vmatmul.mubr.f32.vlgmr.msra.gmra.mrb[0].mxu1 %v510_v59  ;;  %v951_v61 = vadd.f32 -1.0, %v1219_v58 }
 0x170   : > { %1173 = vmatpush3.bf16.msra.mxu1 %v1477_v13  ;;  %v512_v1 = vsel %vm482_vm3, %v470_v36, %v950_v60  ;;  %v718_v13 = vld [vmem:[%s1606_s5 + $0x38] sm:$0xff]  ;;  %v1159_v36 = vpack.c.bf16 %v724_v35, %v723_v34  ;;  %v831_v34 = vand.u32 127, %v387_v21 }
 0x171   : > { %v1221_v62 = vpop.eup %1220  ;;  %v513_v63 = vsel %vm483_vm2, %v472_v39, %v951_v61  ;;  %1166 = vmatprep.subr.bf16.mxu1 %v1479_v14  ;;  %v1147_v14 = vpack.c.bf16 %v718_v13, %v717_v12  ;;  %v1161_v39 = vpack.c.bf16 %v742_v38, %v741_v37 }
 0x172   : > { %v1223_v0 = vpop.eup %1222  ;;  %662 = vmatprep.mubr.f32.mxu1 %v513_v63  ;;  %v952_v2 = vadd.f32 -1.0, %v1221_v62  ;;  %v836_v40 = vand.u32 1, %v831_v34 }
 0x173   : > { %663 = vmatmul.mubr.f32.gmra.mrb[2].mxu1 %v512_v1  ;;  %v953_v3 = vadd.f32 -1.0, %v1223_v0  ;;  %1148 = vmatpush3.bf16.msra.mxu0 %v1147_v14 }
 0x174   : > { %1174 = vmatpush3.bf16.msra.mxu1 %v1494_v19  ;;  %v514_v5 = vsel %vm484_vm5, %v476_v44, %v952_v2  ;;  %v720_v19 = vld [vmem:[%s1606_s5 + $0x48] sm:$0xff]  ;;  %1150 = vmatprep.subr.bf16.mxu0 %v1149_v17  ;;  %v585_v44 = vrot.slane %v580_v43, %v389_v23  ;;  %vm844_vm12 = vcmp.eq.s32.totalorder %v836_v40, 1 }
 0x175   : > { %v515_v4 = vsel %vm485_vm4, %v478_v47, %v953_v3  ;;  %1167 = vmatprep.subr.bf16.mxu1 %v1497_v20  ;;  %v1151_v20 = vpack.c.bf16 %v720_v19, %v719_v18 }
 0x176   : > { %668 = vmatprep.mubr.f32.mxu1 %v515_v4 }
 0x177   : > { %669 = vmatmul.mubr.f32.gmra.mrb[4].mxu1 %v514_v5  ;;  %1152 = vmatpush3.bf16.msra.mxu0 %v1151_v20 }
 0x178   : > { %1175 = vmatpush3.bf16.msra.mxu1 %v1143_v8  ;;  %1154 = vmatprep.subr.bf16.mxu0 %v1153_v27 }
 0x179   : > { %1168 = vmatprep.subr.bf16.mxu1 %v1145_v11 }
 0x17b   : > { %1156 = vmatpush3.bf16.msra.mxu0 %v1155_v30 }
 0x17c   : > { %1176 = vmatpush3.bf16.msra.mxu1 %v1147_v14  ;;  %1158 = vmatprep.subr.bf16.mxu0 %v1157_v33 }
 0x17d   : > { %1169 = vmatprep.subr.bf16.mxu1 %v1149_v17 }
 0x17f   : > { %1160 = vmatpush3.bf16.msra.mxu0 %v1159_v36 }
 0x180   : > { %1177 = vmatpush3.bf16.msra.mxu1 %v1151_v20  ;;  %1162 = vmatprep.subr.bf16.mxu0 %v1161_v39 }
 0x181   : > { %1170 = vmatprep.subr.bf16.mxu1 %v1153_v27 }
 0x183   : > { %1164 = vmatpush3.bf16.msra.mxu0 %v1163_v42 }
 0x184   : > { %1178 = vmatpush3.bf16.msra.mxu1 %v1155_v30 }
 0x185   : > { %1171 = vmatprep.subr.bf16.mxu1 %v1157_v33 }
 0x188   : > { %1179 = vmatpush3.bf16.msra.mxu1 %v1159_v36 }
 0x189   : > { %1172 = vmatprep.subr.bf16.mxu1 %v1161_v39 }
 0x18c   : > { %1180 = vmatpush3.bf16.msra.mxu1 %v1163_v42 }
 0x242   : > { %v658_v46 = vpop.f32.mrb[0].mxu1 }
 0x243   : > { %v659_v47 = vadd.f32 %v658_v46, %v585_v44  ;;  %v660_v48 = vpop.f32.mrb[1].mxu1 }
 0x244   : > { %v661_v49 = vadd.f32 %v660_v48, %v589_v45 }
 0x245   : > { %v681_v50 = vmin.f32 %v659_v47, 0.0  ;;  %vm675_vm7 = vcmp.gt.f32.partialorder %v659_v47, 0.0 }
 0x246   : > { %v682_v51 = vmin.f32 %v661_v49, 0.0  ;;  %v664_v52 = vpop.f32.mrb[2].mxu1  ;;  %vm676_vm6 = vcmp.gt.f32.partialorder %v661_v49, 0.0 }
 0x247   : > { %v687_v53 = vmul.f32 1.442695, %v681_v50  ;;  %v665_v54 = vadd.f32 %v664_v52, %v585_v44  ;;  %v666_v55 = vpop.f32.mrb[3].mxu1 }
 0x248   : > { %v689_v56 = vmul.f32 1.442695, %v682_v51  ;;  %v667_v57 = vadd.f32 %v666_v55, %v589_v45 }
 0x249   : > { %1224 = vpow2.f32 %v687_v53  ;;  %v683_v58 = vmin.f32 %v665_v54, 0.0  ;;  %vm677_vm9 = vcmp.gt.f32.partialorder %v665_v54, 0.0 }
 0x24a   : > { %1226 = vpow2.f32 %v689_v56  ;;  %v684_v59 = vmin.f32 %v667_v57, 0.0  ;;  %v670_v23 = vpop.f32.mrb[4].mxu1  ;;  %vm678_vm8 = vcmp.gt.f32.partialorder %v667_v57, 0.0 }
 0x24b   : > { %v691_v60 = vmul.f32 1.442695, %v683_v58  ;;  %v671_v22 = vadd.f32 %v670_v23, %v585_v44  ;;  %v672_v25 = vpop.f32.mrb[5].mxu1 }
 0x24c   : > { %v693_v61 = vmul.f32 1.442695, %v684_v59  ;;  %v673_v62 = vadd.f32 %v672_v25, %v589_v45 }
 0x24d   : > { %1228 = vpow2.f32 %v691_v60  ;;  %v685_v63 = vmin.f32 %v671_v22, 0.0  ;;  %vm679_vm11 = vcmp.gt.f32.partialorder %v671_v22, 0.0 }
 0x24e   : > { %1230 = vpow2.f32 %v693_v61  ;;  %v686_v0 = vmin.f32 %v673_v62, 0.0  ;;  %vm680_vm10 = vcmp.gt.f32.partialorder %v673_v62, 0.0 }
 0x24f   : > { %v695_v1 = vmul.f32 1.442695, %v685_v63 }
 0x250   : > { %v697_v2 = vmul.f32 1.442695, %v686_v0 }
 0x251   : > { %1232 = vpow2.f32 %v695_v1 }
 0x252   : > { %1234 = vpow2.f32 %v697_v2 }
 0x253   : > { %v1225_v3 = vpop.eup %1224 }
 0x254   : > { %v1227_v4 = vpop.eup %1226  ;;  %v954_v5 = vadd.f32 -1.0, %v1225_v3 }
 0x255   : > { %v955_v6 = vadd.f32 -1.0, %v1227_v4 }
 0x256   : > { %v705_v10 = vsel %vm675_vm7, %v659_v47, %v954_v5 }
 0x257   : > { %v1229_v7 = vpop.eup %1228  ;;  %v706_v8 = vsel %vm676_vm6, %v661_v49, %v955_v6 }
 0x258   : > { %v1231_v9 = vpop.eup %1230  ;;  %v956_v11 = vadd.f32 -1.0, %v1229_v7  ;;  %814 = vmatprep.mubr.f32.mxu0 %v706_v8 }
 0x259   : > { %815 = vmatmul.mubr.f32.vlgmr.msra.gmra.mrb[6].mxu0 %v705_v10  ;;  %v957_v12 = vadd.f32 -1.0, %v1231_v9 }
 0x25a   : > { %v707_v16 = vsel %vm677_vm9, %v665_v54, %v956_v11 }
 0x25b   : > { %v1233_v13 = vpop.eup %1232  ;;  %v708_v14 = vsel %vm678_vm8, %v667_v57, %v957_v12 }
 0x25c   : > { %v1235_v15 = vpop.eup %1234  ;;  %819 = vmatprep.mubr.f32.mxu1 %v708_v14  ;;  %v958_v17 = vadd.f32 -1.0, %v1233_v13 }
 0x25d   : > { %820 = vmatmul.mubr.f32.vlgmr.msra.gmra.mrb[6].mxu1 %v707_v16  ;;  %v959_v18 = vadd.f32 -1.0, %v1235_v15 }
 0x25e   : > { %v709_v20 = vsel %vm679_vm11, %v671_v22, %v958_v17 }
 0x25f   : > { %v710_v19 = vsel %vm680_vm10, %v673_v62, %v959_v18 }
 0x260   : > { %824 = vmatprep.mubr.f32.mxu1 %v710_v19 }
 0x261   : > { %825 = vmatmul.mubr.f32.gmra.mrb[8].mxu1 %v709_v20 }
 0x32c   : > { %v996_v24 = vpop.f32.mrb[6].mxu0 }
 0x32d   : > { %v997_v27 = vpop.f32.mrb[7].mxu0 }
 0x32e   : > { %v998_v28 = vadd.f32 %v997_v27, %v996_v24 }
 0x330   : > { %v817_v29 = vadd.f32 %v998_v28, %v960_v26  ;;  %v999_v30 = vpop.f32.mrb[6].mxu1 }
 0x331   : > { %v1000_v31 = vpop.f32.mrb[7].mxu1 }
 0x332   : > { %v845_v32 = vmul.f32 1.442695, %v817_v29  ;;  %v1001_v33 = vadd.f32 %v1000_v31, %v999_v30 }
 0x334   : > { %1236 = vpow2.f32 %v845_v32  ;;  %v822_v35 = vadd.f32 %v1001_v33, %v960_v26  ;;  %v1002_v36 = vpop.f32.mrb[8].mxu1 }
 0x335   : > { %v1003_v37 = vpop.f32.mrb[9].mxu1 }
 0x336   : > { %v847_v38 = vmul.f32 1.442695, %v822_v35  ;;  %v1004_v39 = vadd.f32 %v1003_v37, %v1002_v36 }
 0x338   : > { %1238 = vpow2.f32 %v847_v38  ;;  %v827_v41 = vadd.f32 %v1004_v39, %v960_v26 }
 0x33a   : > { %v849_v42 = vmul.f32 1.442695, %v827_v41 }
 0x33c   : > { %1240 = vpow2.f32 %v849_v42 }
 0x33e   : > { %v1237_v43 = vpop.eup %1236 }
 0x33f   : > { %v851_v21 = vsel %vm844_vm12, %v1237_v43, %v817_v29 }
 0x340   : > { %855 = vst.msk [vmem:[%s313_s30] sm:$0xff] %vm854_vm13, %v851_v21 }
 0x342   : > { %v1239_v44 = vpop.eup %1238 }
 0x343   : > { %v852_v45 = vsel %vm844_vm12, %v1239_v44, %v822_v35 }
 0x344   : > { %856 = vst.msk [vmem:[%s313_s30 + $0x8] sm:$0xff] %vm854_vm13, %v852_v45 }
 0x346   : > { %v1241_v46 = vpop.eup %1240 }
 0x347   : > { %v853_v47 = vsel %vm844_vm12, %v1241_v46, %v827_v41 }
 0x348   : > { %857 = vst.msk [vmem:[%s313_s30 + $0x10] sm:$0xff] %vm854_vm13, %v853_v47 }
 0x349 PF: > { %s19_s24 = sadd.s32 1, %s1312_s24  }
 0x34a   : > { %p16_p7 = scmp.ge.s32.totalorder %s19_s24, 4  }
 0x34c   :  { %18 = sbr.rel (!%p16_p7) target bundleno = 2 (0x2), region = 87 }
 0x353   :  { %880 = vsyncpa [#allocation3], 1 }
 0x354   :  { %882 = vsyncpa [#allocation3 + $0x1], 1 }
 0x355   :  { %883 = vsyncpa [#allocation5], 1 }

</bundles_post_ra>
